<compile_context>
chip_gen: v6e
topology: v6e:2x2x1
jax: 0.10.0
libtpu: 0.0.40
codegen_flags: <defaults>
</compile_context>

<pallas_src>
import functools

import jax
import jax.numpy as jnp
from jax.experimental import pallas as pl
from jax.experimental.pallas import tpu as pltpu


def _round_up(x, m):
    return (x + m - 1) // m * m


# ------------------------------ Pallas kernel ------------------------------ #
def _kipfnet_kernel(lhat_t_ref, xt_ref, w1t_ref, b1t_ref, wmt_ref, bmt_ref,
                    o_ref, *, K, K_mix, skip):
    """Fused KipfNet forward in feature-major layout (nodes on 128-lane axis).

    out^T = W_mix_stack^T @ Cheb(L_hat, [ReLU(W1_stack^T @ Cheb(L_hat, x^T)+b1)
                                          ; x^T (if skip)]) + b_mix
    """
    lhat_t = lhat_t_ref[...]                      # [N, N]  bf16  (L_hat^T)
    xt = xt_ref[...]                              # [F_in, N] f32

    def hop(s):
        # T_k^T = T_{k-1}^T @ L_hat^T  -- bf16 x bf16 -> f32 accumulate on MXU.
        return jnp.dot(s.astype(jnp.bfloat16), lhat_t,
                       preferred_element_type=jnp.float32)

    def cheb_basis_t(s0, n_hops):
        """[T_0; T_1; ...; T_{n_hops-1}]^T stacked along the sublane axis."""
        ss = [s0]
        if n_hops > 1:
            s_prev2, s_prev1 = s0, hop(s0)
            ss.append(s_prev1)
            for _ in range(2, n_hops):
                # TODO(synk): the 2.0 scale could be folded into the stacked
                # weights (v5e VALU micro-opt); kept explicit for clarity.
                s_k = 2.0 * hop(s_prev1) - s_prev2
                ss.append(s_k)
                s_prev2, s_prev1 = s_prev1, s_k
        return jnp.concatenate(ss, axis=0) if len(ss) > 1 else ss[0]

    # ---- Kipfblock1: ChebConv -> ReLU (dropout p=0.5 is identity in eval) ----
    basis1 = cheb_basis_t(xt, K)                                  # [K*F_in, N]
    h = jnp.dot(w1t_ref[...], basis1, preferred_element_type=jnp.float32)
    h = jnp.maximum(h + b1t_ref[...], 0.0)                        # [nh1, N]
    # TODO(synk): training-mode dropout RNG not implemented; eval-mode exact.

    # ---- optional in/out skip-concat, then conv_mix ChebConv (no ReLU) ----
    feat2 = jnp.concatenate([h, xt], axis=0) if skip else h       # [F2, N]
    basis2 = cheb_basis_t(feat2, K_mix)                           # [K_mix*F2, N]
    out = jnp.dot(wmt_ref[...], basis2, preferred_element_type=jnp.float32)
    o_ref[...] = out + bmt_ref[...]                               # [C_pad, N]


# --------------------------------- wrapper --------------------------------- #
def kipfnet_forward(params, lhat, x, *, inout_skipconn=True):
    """KipfNet forward: one fused pallas_call, whole graph resident in VMEM."""
    N, F_in = x.shape
    w1 = params["w1"]
    K, F_in_w, nh1 = w1.shape
    assert F_in_w == F_in
    wm = params["w_mix"]
    K_mix, F2, C = wm.shape
    assert F2 == (nh1 + F_in if inout_skipconn else nh1)

    C_pad = _round_up(C, 8)  # sublane-align the (transposed) output slab

    # bf16 L_hat^T: MXU-native dtype, half the VMEM/HBM bytes of the dominant
    # operand.  Recurrence / accumulation stay f32 inside the kernel.
    lhat_t_bf16 = lhat.T.astype(jnp.bfloat16)
    xt = x.T.astype(jnp.float32)                                  # [F_in, N]

    # Stacked + transposed 2-D weights:  sum_k T_k @ W_k  ==  one wide matmul.
    w1t = w1.reshape(K * F_in, nh1).T.astype(jnp.float32)         # [nh1, K*F_in]
    wmt = jnp.zeros((C_pad, K_mix * F2), jnp.float32).at[:C, :].set(
        wm.reshape(K_mix * F2, C).T.astype(jnp.float32))          # [C_pad, K_mix*F2]
    b1t = params["b1"].reshape(nh1, 1).astype(jnp.float32)
    bmt = jnp.zeros((C_pad, 1), jnp.float32).at[:C, :].set(
        params["b_mix"].reshape(C, 1).astype(jnp.float32))

    flops = (2 * N * N * F_in * max(K - 1, 0)        # L_hat hops, Kipfblock1
             + 2 * N * (K * F_in) * nh1              # stacked weight matmul 1
             + 2 * N * N * F2 * max(K_mix - 1, 0)    # L_hat hops, conv_mix
             + 2 * N * (K_mix * F2) * C_pad)         # stacked weight matmul 2
    bytes_accessed = (lhat_t_bf16.size * 2 + xt.size * 4 + w1t.size * 4
                      + b1t.size * 4 + wmt.size * 4 + bmt.size * 4
                      + C_pad * N * 4)

    kernel = functools.partial(_kipfnet_kernel, K=K, K_mix=K_mix,
                               skip=inout_skipconn)
    out_t = pl.pallas_call(
        kernel,
        out_shape=jax.ShapeDtypeStruct((C_pad, N), jnp.float32),
        grid=(1,),
        in_specs=[
            pl.BlockSpec((N, N), lambda i: (0, 0)),
            pl.BlockSpec((F_in, N), lambda i: (0, 0)),
            pl.BlockSpec((nh1, K * F_in), lambda i: (0, 0)),
            pl.BlockSpec((nh1, 1), lambda i: (0, 0)),
            pl.BlockSpec((C_pad, K_mix * F2), lambda i: (0, 0)),
            pl.BlockSpec((C_pad, 1), lambda i: (0, 0)),
        ],
        out_specs=pl.BlockSpec((C_pad, N), lambda i: (0, 0)),
        compiler_params=pltpu.CompilerParams(
            dimension_semantics=("arbitrary",),
            vmem_limit_bytes=32 * 1024 * 1024),
        cost_estimate=pl.CostEstimate(flops=flops, transcendentals=0,
                                      bytes_accessed=bytes_accessed),
    )(lhat_t_bf16, xt, w1t, b1t, wmt, bmt)

    # back to node-major [N, num_classes] (lane-dense store happened in-kernel)
    return out_t[:C, :].T


# -------------------------------- JAX glue --------------------------------- #
def scaled_laplacian(edge_index, num_nodes, lambda_max=2.0):
    """L_hat = (2/lambda_max)*(I - D^{-1/2} A D^{-1/2}) - I  (PyG ChebConv)."""
    src, dst = edge_index[0], edge_index[1]
    a = jnp.zeros((num_nodes, num_nodes), jnp.float32).at[dst, src].add(1.0)
    deg = a.sum(axis=1)
    dinv = jnp.where(deg > 0.0, 1.0 / jnp.sqrt(jnp.maximum(deg, 1e-12)), 0.0)
    a_norm = dinv[:, None] * a * dinv[None, :]
    eye = jnp.eye(num_nodes, dtype=jnp.float32)
    lap = eye - a_norm
    return (2.0 / lambda_max) * lap - eye


def glorot(key, shape):
    fan_in, fan_out = shape[-2], shape[-1]
    limit = float(jnp.sqrt(6.0 / (fan_in + fan_out)))
    return jax.random.uniform(key, shape, jnp.float32, -limit, limit)


def init_params(key, num_features, num_classes, nh1, K, K_mix, inout_skipconn):
    k1, k2, k3, k4 = jax.random.split(key, 4)
    f_mix_in = nh1 + num_features if inout_skipconn else nh1
    return {
        "w1": glorot(k1, (K, num_features, nh1)),
        "b1": 0.1 * jax.random.normal(k2, (1, nh1), jnp.float32),
        "w_mix": glorot(k3, (K_mix, f_mix_in, num_classes)),
        "b_mix": 0.1 * jax.random.normal(k4, (1, num_classes), jnp.float32),
    }


# ---------------------------- pure-JAX reference ---------------------------- #
# The reference applies the same (intentional, per perf review) bf16
# quantization of L_hat and of the Chebyshev matmul operands as the kernel;
# everything else (recurrence, weights, bias, ReLU) is f32.
def _cheb_ref(lhat_bf16, feat, w, b, relu):
    K = w.shape[0]
    hp = jax.lax.Precision.HIGHEST

    def lhat_mul(t):
        return jnp.dot(lhat_bf16, t.astype(jnp.bfloat16),
                       preferred_element_type=jnp.float32)

    t_prev2 = feat
    out = jnp.dot(t_prev2, w[0], precision=hp)
    if K > 1:
        t_prev1 = lhat_mul(feat)
        out = out + jnp.dot(t_prev1, w[1], precision=hp)
        for _ in range(2, K):
            t_k = 2.0 * lhat_mul(t_prev1) - t_prev2
            out = out + jnp.dot(t_k, w[_], precision=hp)
            t_prev2, t_prev1 = t_prev1, t_k
    out = out + b
    return jnp.maximum(out, 0.0) if relu else out


def _forward_ref(params, lhat, x, *, inout_skipconn):
    lhat_bf16 = lhat.astype(jnp.bfloat16)
    h = _cheb_ref(lhat_bf16, x, params["w1"], params["b1"], relu=True)
    feat = jnp.concatenate([h, x], axis=1) if inout_skipconn else h
    return _cheb_ref(lhat_bf16, feat, params["w_mix"], params["b_mix"],
                     relu=False)


# ----------------------------------- main ----------------------------------- #
if __name__ == "__main__":
    N = 128                       # nodes -> sits exactly on the 128-lane axis
    num_features = 8
    num_classes = 4
    nh1, K, K_mix = 64, 8, 2      # KipfNet defaults (nh1=64, K=8, K_mix=2)

    key = jax.random.PRNGKey(0)
    kx, kp_a, kp_b = jax.random.split(key, 3)
    x = jax.random.normal(kx, (N, num_features), jnp.float32)

    # deterministic symmetric ring graph, edge_index: [2, 2N]
    idx = jnp.arange(N, dtype=jnp.int32)
    src = jnp.concatenate([idx, (idx + 1) % N])
    dst = jnp.concatenate([(idx + 1) % N, idx])
    edge_index = jnp.stack([src, dst], axis=0)
    lhat = scaled_laplacian(edge_index, N)

    for skip, kp in ((True, kp_a), (False, kp_b)):   # both module branches
        params = init_params(kp, num_features, num_classes, nh1, K, K_mix, skip)
        out = jax.block_until_ready(
            kipfnet_forward(params, lhat, x, inout_skipconn=skip))
        ref = jax.block_until_ready(
            _forward_ref(params, lhat, x, inout_skipconn=skip))
        assert out.shape == (N, num_classes)
        assert jnp.allclose(out, ref, atol=2e-2, rtol=2e-2), (
            skip, float(jnp.max(jnp.abs(out - ref))))

    print("KERNEL_OK")
</pallas_src>

<mosaic_0001>
module attributes {stable_mosaic.version = 11 : i64} {
  func.func @_kipfnet_kernel(%arg0: i32, %arg1: memref<128x128xbf16, #tpu.memory_space<vmem>>, %arg2: memref<8x128xf32, #tpu.memory_space<vmem>>, %arg3: memref<64x64xf32, #tpu.memory_space<vmem>>, %arg4: memref<64x1xf32, #tpu.memory_space<vmem>>, %arg5: memref<8x144xf32, #tpu.memory_space<vmem>>, %arg6: memref<8x1xf32, #tpu.memory_space<vmem>>, %arg7: memref<8x128xf32, #tpu.memory_space<vmem>>) attributes {dimension_semantics = [#tpu.dimension_semantics<arbitrary>], iteration_bounds = array<i64: 1>, scalar_prefetch = 0 : i64, scratch_operands = 0 : i64, tpu.core_type = #tpu.core_type<tc>, window_params = [{pipeline_mode = #tpu.pipeline_mode<synchronous>, transform_indices = @transform_0, window_bounds = array<i64: 128, 128>}, {pipeline_mode = #tpu.pipeline_mode<synchronous>, transform_indices = @transform_1, window_bounds = array<i64: 8, 128>}, {pipeline_mode = #tpu.pipeline_mode<synchronous>, transform_indices = @transform_2, window_bounds = array<i64: 64, 64>}, {pipeline_mode = #tpu.pipeline_mode<synchronous>, transform_indices = @transform_3, window_bounds = array<i64: 64, 1>}, {pipeline_mode = #tpu.pipeline_mode<synchronous>, transform_indices = @transform_4, window_bounds = array<i64: 8, 144>}, {pipeline_mode = #tpu.pipeline_mode<synchronous>, transform_indices = @transform_5, window_bounds = array<i64: 8, 1>}, {pipeline_mode = #tpu.pipeline_mode<synchronous>, transform_indices = @transform_6, window_bounds = array<i64: 8, 128>}]} {
    %c0 = arith.constant 0 : index
    %c0_0 = arith.constant 0 : index
    %0 = vector.load %arg1[%c0, %c0_0] : memref<128x128xbf16, #tpu.memory_space<vmem>>, vector<128x128xbf16>
    %c0_1 = arith.constant 0 : index
    %c0_2 = arith.constant 0 : index
    %1 = vector.load %arg2[%c0_1, %c0_2] : memref<8x128xf32, #tpu.memory_space<vmem>>, vector<8x128xf32>
    %2 = arith.truncf %1 : vector<8x128xf32> to vector<8x128xbf16>
    %cst = arith.constant dense<0.000000e+00> : vector<8x128xf32>
    %3 = tpu.matmul %2, %0, %cst {dimension_numbers = #tpu.dot_dimension_numbers<[1], [0], [0], [1], [0, 0, 1, 1], [], []>} : vector<8x128xbf16>, vector<128x128xbf16>, vector<8x128xf32> -> vector<8x128xf32>
    %4 = arith.truncf %3 : vector<8x128xf32> to vector<8x128xbf16>
    %cst_3 = arith.constant dense<0.000000e+00> : vector<8x128xf32>
    %5 = tpu.matmul %4, %0, %cst_3 {dimension_numbers = #tpu.dot_dimension_numbers<[1], [0], [0], [1], [0, 0, 1, 1], [], []>} : vector<8x128xbf16>, vector<128x128xbf16>, vector<8x128xf32> -> vector<8x128xf32>
    %cst_4 = arith.constant 2.000000e+00 : f32
    %6 = vector.broadcast %cst_4 : f32 to vector<8x128xf32>
    %7 = arith.mulf %6, %5 : vector<8x128xf32>
    %8 = arith.subf %7, %1 : vector<8x128xf32>
    %9 = arith.truncf %8 : vector<8x128xf32> to vector<8x128xbf16>
    %cst_5 = arith.constant dense<0.000000e+00> : vector<8x128xf32>
    %10 = tpu.matmul %9, %0, %cst_5 {dimension_numbers = #tpu.dot_dimension_numbers<[1], [0], [0], [1], [0, 0, 1, 1], [], []>} : vector<8x128xbf16>, vector<128x128xbf16>, vector<8x128xf32> -> vector<8x128xf32>
    %cst_6 = arith.constant 2.000000e+00 : f32
    %11 = vector.broadcast %cst_6 : f32 to vector<8x128xf32>
    %12 = arith.mulf %11, %10 : vector<8x128xf32>
    %13 = arith.subf %12, %3 : vector<8x128xf32>
    %14 = arith.truncf %13 : vector<8x128xf32> to vector<8x128xbf16>
    %cst_7 = arith.constant dense<0.000000e+00> : vector<8x128xf32>
    %15 = tpu.matmul %14, %0, %cst_7 {dimension_numbers = #tpu.dot_dimension_numbers<[1], [0], [0], [1], [0, 0, 1, 1], [], []>} : vector<8x128xbf16>, vector<128x128xbf16>, vector<8x128xf32> -> vector<8x128xf32>
    %cst_8 = arith.constant 2.000000e+00 : f32
    %16 = vector.broadcast %cst_8 : f32 to vector<8x128xf32>
    %17 = arith.mulf %16, %15 : vector<8x128xf32>
    %18 = arith.subf %17, %8 : vector<8x128xf32>
    %19 = arith.truncf %18 : vector<8x128xf32> to vector<8x128xbf16>
    %cst_9 = arith.constant dense<0.000000e+00> : vector<8x128xf32>
    %20 = tpu.matmul %19, %0, %cst_9 {dimension_numbers = #tpu.dot_dimension_numbers<[1], [0], [0], [1], [0, 0, 1, 1], [], []>} : vector<8x128xbf16>, vector<128x128xbf16>, vector<8x128xf32> -> vector<8x128xf32>
    %cst_10 = arith.constant 2.000000e+00 : f32
    %21 = vector.broadcast %cst_10 : f32 to vector<8x128xf32>
    %22 = arith.mulf %21, %20 : vector<8x128xf32>
    %23 = arith.subf %22, %13 : vector<8x128xf32>
    %24 = arith.truncf %23 : vector<8x128xf32> to vector<8x128xbf16>
    %cst_11 = arith.constant dense<0.000000e+00> : vector<8x128xf32>
    %25 = tpu.matmul %24, %0, %cst_11 {dimension_numbers = #tpu.dot_dimension_numbers<[1], [0], [0], [1], [0, 0, 1, 1], [], []>} : vector<8x128xbf16>, vector<128x128xbf16>, vector<8x128xf32> -> vector<8x128xf32>
    %cst_12 = arith.constant 2.000000e+00 : f32
    %26 = vector.broadcast %cst_12 : f32 to vector<8x128xf32>
    %27 = arith.mulf %26, %25 : vector<8x128xf32>
    %28 = arith.subf %27, %18 : vector<8x128xf32>
    %29 = arith.truncf %28 : vector<8x128xf32> to vector<8x128xbf16>
    %cst_13 = arith.constant dense<0.000000e+00> : vector<8x128xf32>
    %30 = tpu.matmul %29, %0, %cst_13 {dimension_numbers = #tpu.dot_dimension_numbers<[1], [0], [0], [1], [0, 0, 1, 1], [], []>} : vector<8x128xbf16>, vector<128x128xbf16>, vector<8x128xf32> -> vector<8x128xf32>
    %cst_14 = arith.constant 2.000000e+00 : f32
    %31 = vector.broadcast %cst_14 : f32 to vector<8x128xf32>
    %32 = arith.mulf %31, %30 : vector<8x128xf32>
    %33 = arith.subf %32, %23 : vector<8x128xf32>
    %34 = tpu.concatenate %1, %3, %8, %13, %18, %23, %28, %33 in 0 : vector<8x128xf32>, vector<8x128xf32>, vector<8x128xf32>, vector<8x128xf32>, vector<8x128xf32>, vector<8x128xf32>, vector<8x128xf32>, vector<8x128xf32> -> vector<64x128xf32>
    %c0_15 = arith.constant 0 : index
    %c0_16 = arith.constant 0 : index
    %35 = vector.load %arg3[%c0_15, %c0_16] : memref<64x64xf32, #tpu.memory_space<vmem>>, vector<64x64xf32>
    %cst_17 = arith.constant dense<0.000000e+00> : vector<64x128xf32>
    %36 = tpu.matmul %35, %34, %cst_17 {dimension_numbers = #tpu.dot_dimension_numbers<[1], [0], [0], [1], [0, 0, 1, 1], [], []>} : vector<64x64xf32>, vector<64x128xf32>, vector<64x128xf32> -> vector<64x128xf32>
    %c0_18 = arith.constant 0 : index
    %c0_19 = arith.constant 0 : index
    %37 = vector.load %arg4[%c0_18, %c0_19] : memref<64x1xf32, #tpu.memory_space<vmem>>, vector<64x1xf32>
    %38 = vector.broadcast %37 : vector<64x1xf32> to vector<64x128xf32>
    %39 = arith.addf %36, %38 : vector<64x128xf32>
    %cst_20 = arith.constant 0.000000e+00 : f32
    %40 = vector.broadcast %cst_20 : f32 to vector<64x128xf32>
    %41 = arith.maximumf %39, %40 : vector<64x128xf32>
    %42 = tpu.concatenate %41, %1 in 0 : vector<64x128xf32>, vector<8x128xf32> -> vector<72x128xf32>
    %43 = arith.truncf %42 : vector<72x128xf32> to vector<72x128xbf16>
    %cst_21 = arith.constant dense<0.000000e+00> : vector<72x128xf32>
    %44 = tpu.matmul %43, %0, %cst_21 {dimension_numbers = #tpu.dot_dimension_numbers<[1], [0], [0], [1], [0, 0, 1, 1], [], []>} : vector<72x128xbf16>, vector<128x128xbf16>, vector<72x128xf32> -> vector<72x128xf32>
    %45 = tpu.concatenate %42, %44 in 0 : vector<72x128xf32>, vector<72x128xf32> -> vector<144x128xf32>
    %c0_22 = arith.constant 0 : index
    %c0_23 = arith.constant 0 : index
    %46 = vector.load %arg5[%c0_22, %c0_23] : memref<8x144xf32, #tpu.memory_space<vmem>>, vector<8x144xf32>
    %cst_24 = arith.constant dense<0.000000e+00> : vector<8x128xf32>
    %47 = tpu.matmul %46, %45, %cst_24 {dimension_numbers = #tpu.dot_dimension_numbers<[1], [0], [0], [1], [0, 0, 1, 1], [], []>} : vector<8x144xf32>, vector<144x128xf32>, vector<8x128xf32> -> vector<8x128xf32>
    %c0_25 = arith.constant 0 : index
    %c0_26 = arith.constant 0 : index
    %48 = vector.load %arg6[%c0_25, %c0_26] : memref<8x1xf32, #tpu.memory_space<vmem>>, vector<8x1xf32>
    %49 = vector.broadcast %48 : vector<8x1xf32> to vector<8x128xf32>
    %50 = arith.addf %47, %49 : vector<8x128xf32>
    %c0_27 = arith.constant 0 : index
    %c0_28 = arith.constant 0 : index
    %51 = vector.load %arg7[%c0_27, %c0_28] : memref<8x128xf32, #tpu.memory_space<vmem>>, vector<8x128xf32>
    tpu.vector_store %arg7[%c0_27, %c0_28], %50 {strides = array<i32>} : memref<8x128xf32, #tpu.memory_space<vmem>>, vector<8x128xf32>,
    return
  }
  func.func @transform_0(%arg0: i32) -> (i32, i32) {
    %c0_i32 = arith.constant 0 : i32
    %c0_i32_0 = arith.constant 0 : i32
    %c0_i32_1 = arith.constant 0 : i32
    return %c0_i32, %c0_i32_0 : i32, i32
  }
  func.func @transform_1(%arg0: i32) -> (i32, i32) {
    %c0_i32 = arith.constant 0 : i32
    %c0_i32_0 = arith.constant 0 : i32
    %c0_i32_1 = arith.constant 0 : i32
    return %c0_i32, %c0_i32_0 : i32, i32
  }
  func.func @transform_2(%arg0: i32) -> (i32, i32) {
    %c0_i32 = arith.constant 0 : i32
    %c0_i32_0 = arith.constant 0 : i32
    %c0_i32_1 = arith.constant 0 : i32
    return %c0_i32, %c0_i32_0 : i32, i32
  }
  func.func @transform_3(%arg0: i32) -> (i32, i32) {
    %c0_i32 = arith.constant 0 : i32
    %c0_i32_0 = arith.constant 0 : i32
    %c0_i32_1 = arith.constant 0 : i32
    return %c0_i32, %c0_i32_0 : i32, i32
  }
  func.func @transform_4(%arg0: i32) -> (i32, i32) {
    %c0_i32 = arith.constant 0 : i32
    %c0_i32_0 = arith.constant 0 : i32
    %c0_i32_1 = arith.constant 0 : i32
    return %c0_i32, %c0_i32_0 : i32, i32
  }
  func.func @transform_5(%arg0: i32) -> (i32, i32) {
    %c0_i32 = arith.constant 0 : i32
    %c0_i32_0 = arith.constant 0 : i32
    %c0_i32_1 = arith.constant 0 : i32
    return %c0_i32, %c0_i32_0 : i32, i32
  }
  func.func @transform_6(%arg0: i32) -> (i32, i32) {
    %c0_i32 = arith.constant 0 : i32
    %c0_i32_0 = arith.constant 0 : i32
    %c0_i32_1 = arith.constant 0 : i32
    return %c0_i32, %c0_i32_0 : i32, i32
  }
}

</mosaic_0001>

<bundles_post_ra>
// kernel: tpu_custom_call.1
= control target key start
LH: loop header
LB: loop body
LE: loop exit
PB: predicated region body
PF: predicated region fallthrough
CT: control target
= control target key end

     0   :  { %11 = vsyncpa [#allocation3], 0  ;;  %s1555_s0 = inlined_call_operand.vmem [shape: bf16[128,128], index: 0, kind: input, shape index: {}]   ;;  %s1556_s1 = inlined_call_operand.hbm [shape: f32[8,128], index: 1, kind: input, shape index: {}]   ;;  %s1557_s2 = inlined_call_operand.hbm [shape: f32[64,64], index: 2, kind: input, shape index: {}]   ;;  %s1558_s3 = inlined_call_operand.vmem [shape: f32[64,1], index: 3, kind: input, shape index: {}]   ;;  %s1559_s4 = inlined_call_operand.vmem [shape: f32[8,144], index: 4, kind: input, shape index: {}]   ;;  %s1560_s5 = inlined_call_operand.vmem [shape: f32[8,1], index: 5, kind: input, shape index: {}]   ;;  %s1561_s6 = inlined_call_operand.hbm [shape: f32[8,128], index: 6, kind: output, shape index: {}]  }
   0x1   :  { %12 = vsyncpa [#allocation6], 0 }
   0x2   :  { %13 = vsyncpa [#allocation4], 0  ;;  %s1181_s21 = smov [#allocation2]   ;;  %s1182_s23 = smov [#allocation5]  }
   0x3   :  { %s22_s22 = sshll.u32 %s1181_s21, 4  ;;  %s31_s24 = sshll.u32 %s1182_s23, 4  ;;  %s23_s22 = int_to_ptr.vmem [resolvable:$true] %s22_s22  ;;  %s32_s24 = int_to_ptr.vmem [resolvable:$true] %s31_s24 }
   0x4   :  { %s1123_s25 = scalar_lea.vmem %s23_s22, 128  ;;  %p1128_p1 = scmp.lt.s32.totalorder %s23_s22, %s23_s22 }
   0x5   :  { %p1124_p0 = scmp.ne.s32.totalorder %s23_s22, %s1123_s25  ;;  %p1129_p2 = scmp.lt.s32.totalorder %s1123_s25, %s1123_s25 }
   0x7   :  { %p1130_p3 = por %p1129_p2, %p1128_p1 }
   0x9   :  { %p1131_p4 = pnand %p1130_p3, %p1124_p0 }
   0xb   :  { %1134 = shalt.err (!%p1131_p4)
}
   0xc   :  { %25 = dma.hbm_to_vmem [thread:$0]  %s1556_s1, 128, %s23_s22, [#allocation3]  }
   0xd   :  { %s1143_s28 = scalar_lea.vmem %s32_s24, 1024  ;;  %p1148_p6 = scmp.lt.s32.totalorder %s32_s24, %s32_s24 }
   0xe   :  { %p1144_p5 = scmp.ne.s32.totalorder %s32_s24, %s1143_s28  ;;  %p1149_p7 = scmp.lt.s32.totalorder %s1143_s28, %s1143_s28 }
  0x10   :  { %p1150_p8 = por %p1149_p7, %p1148_p6 }
  0x12   :  { %p1151_p9 = pnand %p1150_p8, %p1144_p5 }
  0x14   :  { %1154 = shalt.err (!%p1151_p9)
}
  0x15   :  { %s1183_s29 = smov 128   ;;  %s1184_s30 = smov 8  }
  0x16   :  { %37 = dma.hbm_to_vmem [thread:$0]  %s1557_s2, 1024, %s32_s24, [#allocation6], %s1183_s29, %s1183_s29, %s1184_s30  }
  0x17   :  { %1175 = dma.done.wait [#allocation3], 128  }
  0x18   :  { %1176 = vsyncadd [#allocation3], 4294967168 }
  0x19   :  { %1177 = dma.done.wait [#allocation6], 1024  }
  0x1a   :  { %1178 = vsyncadd [#allocation6], 4294966272  ;;  %v1185_v0 = vmov 0.0   ;;  %vm1186_vm0 = vmmov 0   ;;  %v1239_v1 = vld [vmem:[%s1555_s0 + $0x38] sm:$0xff]   ;;  %v1245_v2 = vld [vmem:[%s1555_s0 + $0x30] sm:$0xff]  }
  0x1b   :  { %893 = vmatprep.subr.bf16.mxu0 %v1185_v0  ;;  %909 = vmatprep.mubr.msk.bf16.mxu0 %vm1186_vm0, %v1185_v0  ;;  %v1254_v3 = vld [vmem:[%s1555_s0 + $0x28] sm:$0xff]   ;;  %v1263_v4 = vld [vmem:[%s1555_s0 + $0x20] sm:$0xff]   ;;  %v1272_v5 = vld [vmem:[%s1555_s0 + $0x18] sm:$0xff]   ;;  %vm471_vm1 = vcmask 523264   ;;  %v1187_v53 = vmov 0   ;;  %vm693_vm2 = vcmask 130048  }
  0x1c   :  { %913 = vmatprep.subr.bf16.mxu1 %v1185_v0  ;;  %929 = vmatprep.mubr.msk.bf16.mxu1 %vm1186_vm0, %v1185_v0  ;;  %v1281_v6 = vld [vmem:[%s1555_s0 + $0x10] sm:$0xff]   ;;  %v1290_v7 = vld [vmem:[%s1555_s0 + $0x8] sm:$0xff]   ;;  %v1299_v8 = vld [vmem:[%s1555_s0] sm:$0xff]   ;;  %s1188_s16 = smov [#allocation7]  }
  0x1d   :  { %894 = vmatpush3.bf16.msra.mxu0 %v1239_v1  ;;  %914 = vmatpush3.bf16.msra.mxu1 %v1239_v1  ;;  %v1301_v9 = vld [vmem:[#allocation2] sm:$0xff]  ;;  %v415_v51 = vld [vmem:[#allocation5] sm:$0xff]  ;;  %v425_v54 = vld [vmem:[%s1558_s3 + $0x10] sm:$0xff]  ;;  %s774_s17 = sshll.u32 %s1188_s16, 4  ;;  %s775_s17 = int_to_ptr.vmem [resolvable:$true] %s774_s17 }
  0x1e   :  { %895 = vmatprep.subr.bf16.mxu0 %v1185_v0  ;;  %915 = vmatprep.subr.bf16.mxu1 %v1185_v0  ;;  %v1308_v10 = vpack.c.bf16 %v1301_v9, %v1301_v9  ;;  %v423_v52 = vld [vmem:[%s1558_s3] sm:$0xff]  ;;  %v424_v55 = vld [vmem:[%s1558_s3 + $0x8] sm:$0xff]  ;;  %v426_v56 = vld [vmem:[%s1558_s3 + $0x18] sm:$0xff]  ;;  %s1155_s18 = scalar_lea.vmem %s775_s17, 128  ;;  %p1160_p11 = scmp.lt.s32.totalorder %s775_s17, %s775_s17 }
  0x1f   :  { %1105 = vset.pattern.permute.xlu0 %v1187_v53  ;;  %1106 = vset.pattern.permute.xlu1 %v1187_v53  ;;  %v427_v57 = vld [vmem:[%s1558_s3 + $0x20] sm:$0xff]  ;;  %v428_v58 = vld [vmem:[%s1558_s3 + $0x28] sm:$0xff]  ;;  %v429_v59 = vld [vmem:[%s1558_s3 + $0x30] sm:$0xff]  ;;  %p1156_p10 = scmp.ne.s32.totalorder %s775_s17, %s1155_s18  ;;  %p1161_p12 = scmp.lt.s32.totalorder %s1155_s18, %s1155_s18 }
  0x20   :  { %433 = vperm.xlu0 %1105, %v423_v52   ;;  %443 = vperm.xlu1 %1106, %v425_v54   ;;  %v430_v60 = vld [vmem:[%s1558_s3 + $0x38] sm:$0xff]  ;;  %v687_v61 = vld [vmem:[%s1560_s5] sm:$0xff] }
  0x21   :  { %896 = vmatpush3.bf16.msra.mxu0 %v1245_v2  ;;  %916 = vmatpush3.bf16.msra.mxu1 %v1245_v2  ;;  %p1162_p13 = por %p1161_p12, %p1160_p11 }
  0x22   :  { %897 = vmatprep.subr.bf16.mxu0 %v1185_v0  ;;  %917 = vmatprep.subr.bf16.mxu1 %v1185_v0 }
  0x23   :  { %p1163_p0 = pnand %p1162_p13, %p1156_p10 }
  0x24   :  { %438 = vperm.xlu0 %1105, %v424_v55   ;;  %448 = vperm.xlu1 %1106, %v426_v56  }
  0x25   :  { %898 = vmatpush3.bf16.msra.mxu0 %v1254_v3  ;;  %918 = vmatpush3.bf16.msra.mxu1 %v1254_v3 }
  0x26   :  { %899 = vmatprep.subr.bf16.mxu0 %v1185_v0  ;;  %919 = vmatprep.subr.bf16.mxu1 %v1185_v0 }
  0x28   :  { %453 = vperm.xlu0 %1105, %v427_v57   ;;  %458 = vperm.xlu1 %1106, %v428_v58  }
  0x29   :  { %900 = vmatpush3.bf16.msra.mxu0 %v1263_v4  ;;  %920 = vmatpush3.bf16.msra.mxu1 %v1263_v4 }
  0x2a   :  { %901 = vmatprep.subr.bf16.mxu0 %v1185_v0  ;;  %921 = vmatprep.subr.bf16.mxu1 %v1185_v0 }
  0x2c   :  { %463 = vperm.xlu0 %1105, %v429_v59   ;;  %468 = vperm.xlu1 %1106, %v430_v60  }
  0x2d   :  { %902 = vmatpush3.bf16.msra.mxu0 %v1272_v5  ;;  %922 = vmatpush3.bf16.msra.mxu1 %v1272_v5 }
  0x2e   :  { %903 = vmatprep.subr.bf16.mxu0 %v1185_v0  ;;  %923 = vmatprep.subr.bf16.mxu1 %v1185_v0 }
  0x30   :  { %690 = vperm.xlu0 %1105, %v687_v61  }
  0x31   :  { %904 = vmatpush3.bf16.msra.mxu0 %v1281_v6  ;;  %924 = vmatpush3.bf16.msra.mxu1 %v1281_v6 }
  0x32   :  { %905 = vmatprep.subr.bf16.mxu0 %v1185_v0  ;;  %925 = vmatprep.subr.bf16.mxu1 %v1185_v0 }
  0x35   :  { %906 = vmatpush3.bf16.msra.mxu0 %v1290_v7  ;;  %926 = vmatpush3.bf16.msra.mxu1 %v1290_v7 }
  0x36   :  { %907 = vmatprep.subr.bf16.mxu0 %v1185_v0  ;;  %927 = vmatprep.subr.bf16.mxu1 %v1185_v0 }
  0x39   :  { %908 = vmatpush3.bf16.msra.mxu0 %v1299_v8  ;;  %928 = vmatpush3.bf16.msra.mxu1 %v1299_v8 }
  0x3a   :  { %933 = vmatprep.subr.bf16.mxu0 %v1185_v0  ;;  %953 = vmatprep.subr.bf16.mxu1 %v1185_v0 }
  0x3c   :  { %910 = vmatmul.mubr.bf16.vlgmr.msra.gmra.mxu0 %v1308_v10 }
  0x3d   :  { %934 = vmatpush3.bf16.msra.mxu0 %v1239_v1  ;;  %949 = vmatprep.mubr.msk.bf16.mxu0 %vm1186_vm0, %v1185_v0 }
  0x3e   :  { %935 = vmatprep.subr.bf16.mxu0 %v1185_v0 }
  0x41   :  { %936 = vmatpush3.bf16.msra.mxu0 %v1245_v2 }
  0x42   :  { %937 = vmatprep.subr.bf16.mxu0 %v1185_v0 }
  0x45   :  { %938 = vmatpush3.bf16.msra.mxu0 %v1254_v3 }
  0x46   :  { %939 = vmatprep.subr.bf16.mxu0 %v1185_v0 }
  0x49   :  { %940 = vmatpush3.bf16.msra.mxu0 %v1263_v4 }
  0x4a   :  { %941 = vmatprep.subr.bf16.mxu0 %v1185_v0 }
  0x4d   :  { %942 = vmatpush3.bf16.msra.mxu0 %v1272_v5 }
  0x4e   :  { %943 = vmatprep.subr.bf16.mxu0 %v1185_v0 }
  0x51   :  { %944 = vmatpush3.bf16.msra.mxu0 %v1281_v6 }
  0x52   :  { %945 = vmatprep.subr.bf16.mxu0 %v1185_v0 }
  0x55   :  { %946 = vmatpush3.bf16.msra.mxu0 %v1290_v7 }
  0x56   :  { %947 = vmatprep.subr.bf16.mxu0 %v1185_v0 }
  0x59   :  { %948 = vmatpush3.bf16.msra.mxu0 %v1299_v8 }
  0x5a   :  { %973 = vmatprep.subr.bf16.mxu0 %v1185_v0 }
  0xfc   :  { %v1333_v11 = vpop.f32.mrf.mxu0 }
  0xfd   :  { %v157_v12 = vpack.c.bf16 %v1333_v11, %v1333_v11 }
  0xfe   :  { %v911_v13 = vpop.f32.mrf.mxu0 }
  0xff   :  { %930 = vmatmul.mubr.bf16.vlgmr.msra.gmra.mxu1 %v157_v12 }
 0x100   :  { %v154_v14 = vpop.f32.mrf.mxu0  ;;  %954 = vmatpush3.bf16.msra.mxu1 %v1239_v1  ;;  %969 = vmatprep.mubr.msk.bf16.mxu1 %vm1186_vm0, %v1185_v0 }
 0x101   :  { %955 = vmatprep.subr.bf16.mxu1 %v1185_v0 }
 0x102   :  { %v912_v15 = vpop.f32.mrf.mxu0 }
 0x104   :  { %956 = vmatpush3.bf16.msra.mxu1 %v1245_v2 }
 0x105   :  { %957 = vmatprep.subr.bf16.mxu1 %v1185_v0 }
 0x108   :  { %958 = vmatpush3.bf16.msra.mxu1 %v1254_v3 }
 0x109   :  { %959 = vmatprep.subr.bf16.mxu1 %v1185_v0 }
 0x10c   :  { %960 = vmatpush3.bf16.msra.mxu1 %v1263_v4 }
 0x10d   :  { %961 = vmatprep.subr.bf16.mxu1 %v1185_v0 }
 0x110   :  { %962 = vmatpush3.bf16.msra.mxu1 %v1272_v5 }
 0x111   :  { %963 = vmatprep.subr.bf16.mxu1 %v1185_v0 }
 0x114   :  { %964 = vmatpush3.bf16.msra.mxu1 %v1281_v6 }
 0x115   :  { %965 = vmatprep.subr.bf16.mxu1 %v1185_v0 }
 0x118   :  { %966 = vmatpush3.bf16.msra.mxu1 %v1290_v7 }
 0x119   :  { %967 = vmatprep.subr.bf16.mxu1 %v1185_v0 }
 0x11c   :  { %968 = vmatpush3.bf16.msra.mxu1 %v1299_v8 }
 0x11d   :  { %993 = vmatprep.subr.bf16.mxu1 %v1185_v0 }
 0x1bf   :  { %v192_v16 = vpop.f32.mrf.mxu1 }
 0x1c0   :  { %v198_v17 = vmul.f32 2.0, %v192_v16  ;;  %v416_v16 = vld [vmem:[#allocation5 + $0x8] sm:$0xff] }
 0x1c1   :  { %v931_v18 = vpop.f32.mrf.mxu1 }
 0x1c2   :  { %v1356_v19 = vsub.f32 %v198_v17, %v1301_v9  ;;  %v417_v17 = vld [vmem:[#allocation5 + $0x10] sm:$0xff]  ;;  %v418_v18 = vld [vmem:[#allocation5 + $0x18] sm:$0xff] }
 0x1c3   :  { %v195_v20 = vpop.f32.mrf.mxu1 }
 0x1c4   :  { %v200_v21 = vpack.c.bf16 %v1356_v19, %v1356_v19  ;;  %v421_v20 = vld [vmem:[#allocation5 + $0x30] sm:$0xff] }
 0x1c5   :  { %v932_v22 = vpop.f32.mrf.mxu1 }
 0x1c6   :  { %950 = vmatmul.mubr.bf16.vlgmr.msra.gmra.mxu0 %v200_v21  ;;  %v422_v21 = vld [vmem:[#allocation5 + $0x38] sm:$0xff] }
 0x1c7   :  { %974 = vmatpush3.bf16.msra.mxu0 %v1239_v1  ;;  %989 = vmatprep.mubr.msk.bf16.mxu0 %vm1186_vm0, %v1185_v0 }
 0x1c8   :  { %975 = vmatprep.subr.bf16.mxu0 %v1185_v0 }
 0x1cb   :  { %976 = vmatpush3.bf16.msra.mxu0 %v1245_v2 }
 0x1cc   :  { %977 = vmatprep.subr.bf16.mxu0 %v1185_v0 }
 0x1cf   :  { %978 = vmatpush3.bf16.msra.mxu0 %v1254_v3 }
 0x1d0   :  { %979 = vmatprep.subr.bf16.mxu0 %v1185_v0 }
 0x1d3   :  { %980 = vmatpush3.bf16.msra.mxu0 %v1263_v4 }
 0x1d4   :  { %981 = vmatprep.subr.bf16.mxu0 %v1185_v0 }
 0x1d7   :  { %982 = vmatpush3.bf16.msra.mxu0 %v1272_v5 }
 0x1d8   :  { %983 = vmatprep.subr.bf16.mxu0 %v1185_v0 }
 0x1db   :  { %984 = vmatpush3.bf16.msra.mxu0 %v1281_v6 }
 0x1dc   :  { %985 = vmatprep.subr.bf16.mxu0 %v1185_v0 }
 0x1df   :  { %986 = vmatpush3.bf16.msra.mxu0 %v1290_v7 }
 0x1e0   :  { %987 = vmatprep.subr.bf16.mxu0 %v1185_v0 }
 0x1e3   :  { %988 = vmatpush3.bf16.msra.mxu0 %v1299_v8 }
 0x1e4   :  { %1013 = vmatprep.subr.bf16.mxu0 %v1185_v0 }
 0x286   :  { %v235_v23 = vpop.f32.mrf.mxu0 }
 0x287   :  { %v241_v24 = vmul.f32 2.0, %v235_v23 }
 0x288   :  { %v951_v25 = vpop.f32.mrf.mxu0 }
 0x289   :  { %v1379_v26 = vsub.f32 %v241_v24, %v1333_v11 }
 0x28a   :  { %v238_v27 = vpop.f32.mrf.mxu0 }
 0x28b   :  { %v243_v28 = vpack.c.bf16 %v1379_v26, %v1379_v26 }
 0x28c   :  { %v952_v29 = vpop.f32.mrf.mxu0 }
 0x28d   :  { %970 = vmatmul.mubr.bf16.vlgmr.msra.gmra.mxu1 %v243_v28 }
 0x28e   :  { %994 = vmatpush3.bf16.msra.mxu1 %v1239_v1  ;;  %1009 = vmatprep.mubr.msk.bf16.mxu1 %vm1186_vm0, %v1185_v0 }
 0x28f   :  { %995 = vmatprep.subr.bf16.mxu1 %v1185_v0 }
 0x292   :  { %996 = vmatpush3.bf16.msra.mxu1 %v1245_v2 }
 0x293   :  { %997 = vmatprep.subr.bf16.mxu1 %v1185_v0 }
 0x296   :  { %998 = vmatpush3.bf16.msra.mxu1 %v1254_v3 }
 0x297   :  { %999 = vmatprep.subr.bf16.mxu1 %v1185_v0 }
 0x29a   :  { %1000 = vmatpush3.bf16.msra.mxu1 %v1263_v4 }
 0x29b   :  { %1001 = vmatprep.subr.bf16.mxu1 %v1185_v0 }
 0x29e   :  { %1002 = vmatpush3.bf16.msra.mxu1 %v1272_v5 }
 0x29f   :  { %1003 = vmatprep.subr.bf16.mxu1 %v1185_v0 }
 0x2a2   :  { %1004 = vmatpush3.bf16.msra.mxu1 %v1281_v6 }
 0x2a3   :  { %1005 = vmatprep.subr.bf16.mxu1 %v1185_v0 }
 0x2a6   :  { %1006 = vmatpush3.bf16.msra.mxu1 %v1290_v7 }
 0x2a7   :  { %1007 = vmatprep.subr.bf16.mxu1 %v1185_v0 }
 0x2aa   :  { %1008 = vmatpush3.bf16.msra.mxu1 %v1299_v8 }
 0x34d   :  { %v278_v30 = vpop.f32.mrf.mxu1 }
 0x34e   :  { %v284_v31 = vmul.f32 2.0, %v278_v30 }
 0x34f   :  { %v971_v32 = vpop.f32.mrf.mxu1 }
 0x350   :  { %v1401_v33 = vsub.f32 %v284_v31, %v1356_v19 }
 0x351   :  { %v281_v34 = vpop.f32.mrf.mxu1 }
 0x352   :  { %v286_v35 = vpack.c.bf16 %v1401_v33, %v1401_v33 }
 0x353   :  { %v972_v36 = vpop.f32.mrf.mxu1 }
 0x354   :  { %990 = vmatmul.mubr.bf16.vlgmr.msra.gmra.mxu0 %v286_v35 }
 0x355   :  { %1014 = vmatpush3.bf16.msra.mxu0 %v1239_v1  ;;  %1029 = vmatprep.mubr.msk.bf16.mxu0 %vm1186_vm0, %v1185_v0 }
 0x356   :  { %1015 = vmatprep.subr.bf16.mxu0 %v1185_v0 }
 0x359   :  { %1016 = vmatpush3.bf16.msra.mxu0 %v1245_v2 }
 0x35a   :  { %1017 = vmatprep.subr.bf16.mxu0 %v1185_v0 }
 0x35d   :  { %1018 = vmatpush3.bf16.msra.mxu0 %v1254_v3 }
 0x35e   :  { %1019 = vmatprep.subr.bf16.mxu0 %v1185_v0 }
 0x361   :  { %1020 = vmatpush3.bf16.msra.mxu0 %v1263_v4 }
 0x362   :  { %1021 = vmatprep.subr.bf16.mxu0 %v1185_v0 }
 0x365   :  { %1022 = vmatpush3.bf16.msra.mxu0 %v1272_v5 }
 0x366   :  { %1023 = vmatprep.subr.bf16.mxu0 %v1185_v0 }
 0x369   :  { %1024 = vmatpush3.bf16.msra.mxu0 %v1281_v6 }
 0x36a   :  { %1025 = vmatprep.subr.bf16.mxu0 %v1185_v0 }
 0x36d   :  { %1026 = vmatpush3.bf16.msra.mxu0 %v1290_v7 }
 0x36e   :  { %1027 = vmatprep.subr.bf16.mxu0 %v1185_v0 }
 0x371   :  { %1028 = vmatpush3.bf16.msra.mxu0 %v1299_v8 }
 0x372   :  { %697 = vmatprep.subr.mxu0 %v1185_v0 }
 0x414   :  { %v321_v37 = vpop.f32.mrf.mxu0 }
 0x415   :  { %v327_v38 = vmul.f32 2.0, %v321_v37 }
 0x416   :  { %v991_v39 = vpop.f32.mrf.mxu0 }
 0x417   :  { %v328_v40 = vsub.f32 %v327_v38, %v1379_v26 }
 0x418   :  { %v324_v41 = vpop.f32.mrf.mxu0 }
 0x419   :  { %v329_v42 = vpack.c.bf16 %v328_v40, %v328_v40 }
 0x41a   :  { %v992_v43 = vpop.f32.mrf.mxu0 }
 0x41b   :  { %1010 = vmatmul.mubr.bf16.vlgmr.msra.gmra.mxu1 %v329_v42 }
 0x41c   :  { %1049 = vmatprep.mubr.msk.f32.mxu1 %vm471_vm1, %v415_v51 }
 0x4db   :  { %v364_v44 = vpop.f32.mrf.mxu1 }
 0x4dc   :  { %v370_v45 = vmul.f32 2.0, %v364_v44 }
 0x4dd   :  { %v1011_v46 = vpop.f32.mrf.mxu1 }
 0x4de   :  { %v371_v47 = vsub.f32 %v370_v45, %v1401_v33 }
 0x4df   :  { %v367_v48 = vpop.f32.mrf.mxu1 }
 0x4e0   :  { %v372_v49 = vpack.c.bf16 %v371_v47, %v371_v47 }
 0x4e1   :  { %v1012_v50 = vpop.f32.mrf.mxu1 }
 0x4e2   :  { %1030 = vmatmul.mubr.bf16.vlgmr.msra.gmra.mxu0 %v372_v49  ;;  %v686_v50 = vld [vmem:[%s1559_s4 + $0x8] sm:$0xff] }
 0x4e3   :  { %800 = vmatprep.mubr.msk.f32.mxu0 %vm693_vm2, %v686_v50 }
 0x5a2   :  { %v407_v62 = vpop.f32.mrf.mxu0 }
 0x5a3   :  { %v413_v63 = vmul.f32 2.0, %v407_v62 }
 0x5a4   :  { %v1031_v12 = vpop.f32.mrf.mxu0 }
 0x5a5   :  { %v414_v13 = vsub.f32 %v413_v63, %v328_v40 }
 0x5a6   :  { %v410_v14 = vpop.f32.mrf.mxu0 }
 0x5a7   :  { %1033 = vmatprep.subr.mxu1 %v414_v13 }
 0x5a8   :  { %v1032_v15 = vpop.f32.mrf.mxu0  ;;  %1034 = vmatpush3.msra.mxu1 %v414_v13 }
 0x5a9   :  { %1035 = vmatprep.subr.mxu1 %v371_v47 }
 0x5aa   :  { %1036 = vmatpush3.msra.mxu1 %v371_v47 }
 0x5ab   :  { %1037 = vmatprep.subr.mxu1 %v328_v40 }
 0x5ac   :  { %1038 = vmatpush3.msra.mxu1 %v328_v40 }
 0x5ad   :  { %1039 = vmatprep.subr.mxu1 %v1401_v33 }
 0x5ae   :  { %1040 = vmatpush3.msra.mxu1 %v1401_v33 }
 0x5af   :  { %1041 = vmatprep.subr.mxu1 %v1379_v26 }
 0x5b0   :  { %1042 = vmatpush3.msra.mxu1 %v1379_v26 }
 0x5b1   :  { %1043 = vmatprep.subr.mxu1 %v1356_v19 }
 0x5b2   :  { %1044 = vmatpush3.msra.mxu1 %v1356_v19  ;;  %v419_v19 = vld [vmem:[#allocation5 + $0x20] sm:$0xff] }
 0x5b3   :  { %1045 = vmatprep.subr.mxu1 %v1333_v11 }
 0x5b4   :  { %1046 = vmatpush3.msra.mxu1 %v1333_v11  ;;  %v420_v11 = vld [vmem:[#allocation5 + $0x28] sm:$0xff] }
 0x5b5   :  { %1047 = vmatprep.subr.mxu1 %v1301_v9 }
 0x5b6   :  { %1048 = vmatpush3.msra.mxu1 %v1301_v9 }
 0x5b7   :  { %1050 = vmatmul.mubr.msk.f32.vlgmr.msra.gmra.mxu1 %vm471_vm1, %v416_v16  ;;  %1061 = vmatprep.subr.bf16.mxu1 %v1185_v0 }
 0x5b8   :  { %1052 = vmatprep.mubr.msk.f32.mxu1 %vm471_vm1, %v417_v17  ;;  %1062 = vmatpush3.bf16.msra.mxu1 %v1239_v1  ;;  %v434_v1 = vpop.permute.xlu0 %433 }
 0x5b9   :  { %1063 = vmatprep.subr.bf16.mxu1 %v1185_v0 }
 0x5bb   :  { %1053 = vmatmul.mubr.msk.f32.gmra.mxu1 %vm471_vm1, %v418_v18 }
 0x5bc   :  { %1055 = vmatprep.mubr.msk.f32.mxu1 %vm471_vm1, %v419_v19  ;;  %1064 = vmatpush3.bf16.msra.mxu1 %v1245_v2  ;;  %v444_v2 = vpop.permute.xlu1 %443 }
 0x5bd   :  { %1065 = vmatprep.subr.bf16.mxu1 %v1185_v0 }
 0x5bf   :  { %1056 = vmatmul.mubr.msk.f32.gmra.mxu1 %vm471_vm1, %v420_v11 }
 0x5c0   :  { %1058 = vmatprep.mubr.msk.f32.mxu1 %vm471_vm1, %v421_v20  ;;  %1066 = vmatpush3.bf16.msra.mxu1 %v1254_v3  ;;  %v439_v3 = vpop.permute.xlu0 %438  ;;  %v449_v26 = vpop.permute.xlu1 %448 }
 0x5c1   :  { %1067 = vmatprep.subr.bf16.mxu1 %v1185_v0 }
 0x5c3   :  { %1059 = vmatmul.mubr.msk.f32.gmra.mxu1 %vm471_vm1, %v422_v21 }
 0x5c4   :  { %1068 = vmatpush3.bf16.msra.mxu1 %v1263_v4  ;;  %1077 = vmatprep.mubr.msk.bf16.mxu1 %vm1186_vm0, %v1185_v0  ;;  %v454_v33 = vpop.permute.xlu0 %453  ;;  %v459_v36 = vpop.permute.xlu1 %458 }
 0x5c5   :  { %1069 = vmatprep.subr.bf16.mxu1 %v1185_v0 }
 0x5c8   :  { %1070 = vmatpush3.bf16.msra.mxu1 %v1272_v5  ;;  %v464_v42 = vpop.permute.xlu0 %463  ;;  %v469_v45 = vpop.permute.xlu1 %468 }
 0x5c9   :  { %1071 = vmatprep.subr.bf16.mxu1 %v1185_v0 }
 0x5cc   :  { %1072 = vmatpush3.bf16.msra.mxu1 %v1281_v6  ;;  %v691_v18 = vpop.permute.xlu0 %690 }
 0x5cd   :  { %1073 = vmatprep.subr.bf16.mxu1 %v1185_v0 }
 0x5d0   :  { %1074 = vmatpush3.bf16.msra.mxu1 %v1290_v7 }
 0x5d1   :  { %1075 = vmatprep.subr.bf16.mxu1 %v1185_v0 }
 0x5d4   :  { %1076 = vmatpush3.bf16.msra.mxu1 %v1299_v8 }
 0x677   :  { %v1051_v4 = vpop.f32.mrf.mxu1 }
 0x678   :  { %v1488_v22 = vadd.f32 %v1051_v4, %v439_v3 }
 0x679   :  { %v562_v23 = vpop.f32.mrf.mxu1 }
 0x67a   :  { %v1490_v5 = vadd.f32 %v562_v23, %v434_v1  ;;  %v602_v6 = vmax.f32 %v1488_v22, 0.0 }
 0x67b   :  { %v1054_v24 = vpop.f32.mrf.mxu1 }
 0x67c   :  { %v601_v25 = vmax.f32 %v1490_v5, 0.0  ;;  %v1498_v27 = vadd.f32 %v1054_v24, %v449_v26 }
 0x67d   :  { %v572_v7 = vpop.f32.mrf.mxu1 }
 0x67e   :  { %v609_v8 = vpack.c.bf16 %v602_v6, %v601_v25  ;;  %v1500_v28 = vadd.f32 %v572_v7, %v444_v2  ;;  %v604_v30 = vmax.f32 %v1498_v27, 0.0 }
 0x67f   :  { %v1057_v29 = vpop.f32.mrf.mxu1 }
 0x680   :  { %1078 = vmatmul.mubr.bf16.vlgmr.msra.gmra.mxu1 %v609_v8  ;;  %v603_v31 = vmax.f32 %v1500_v28, 0.0  ;;  %v588_v38 = vadd.f32 %v1057_v29, %v459_v36 }
 0x681   :  { %1081 = vmatprep.mubr.msk.bf16.mxu1 %vm1186_vm0, %v1185_v0  ;;  %v582_v32 = vpop.f32.mrf.mxu1 }
 0x682   :  { %v610_v34 = vpack.c.bf16 %v604_v30, %v603_v31  ;;  %v1510_v35 = vadd.f32 %v582_v32, %v454_v33  ;;  %v606_v41 = vmax.f32 %v588_v38, 0.0 }
 0x683   :  { %v1060_v37 = vpop.f32.mrf.mxu1 }
 0x684   :  { %v605_v39 = vmax.f32 %v1510_v35, 0.0  ;;  %v598_v46 = vadd.f32 %v1060_v37, %v469_v45 }
 0x685   :  { %v592_v40 = vpop.f32.mrf.mxu1 }
 0x686   :  { %v611_v43 = vpack.c.bf16 %v606_v41, %v605_v39  ;;  %v593_v44 = vadd.f32 %v592_v40, %v464_v42  ;;  %v608_v48 = vmax.f32 %v598_v46, 0.0 }
 0x688   :  { %1082 = vmatmul.mubr.bf16.gmra.mxu1 %v610_v34  ;;  %v607_v47 = vmax.f32 %v593_v44, 0.0 }
 0x689   :  { %1085 = vmatprep.mubr.msk.bf16.mxu1 %vm1186_vm0, %v1185_v0 }
 0x68a   :  { %v612_v49 = vpack.c.bf16 %v608_v48, %v607_v47 }
 0x690   :  { %1086 = vmatmul.mubr.bf16.gmra.mxu1 %v611_v43 }
 0x691   :  { %1089 = vmatprep.mubr.msk.bf16.mxu1 %vm1186_vm0, %v1185_v0 }
 0x698   :  { %1090 = vmatmul.mubr.bf16.gmra.mxu1 %v612_v49 }
 0x699   :  { %1093 = vmatprep.mubr.msk.bf16.mxu1 %vm1186_vm0, %v1185_v0 }
 0x6a0   :  { %1094 = vmatmul.mubr.bf16.gmra.mxu1 %v1308_v10 }
 0x740   :  { %v647_v51 = vpop.f32.mrf.mxu1 }
 0x742   :  { %v1079_v52 = vpop.f32.mrf.mxu1 }
 0x744   :  { %v650_v53 = vpop.f32.mrf.mxu1 }
 0x746   :  { %v1080_v54 = vpop.f32.mrf.mxu1 }
 0x748   :  { %v655_v55 = vpop.f32.mrf.mxu1 }
 0x74a   :  { %v1083_v56 = vpop.f32.mrf.mxu1 }
 0x74c   :  { %v658_v57 = vpop.f32.mrf.mxu1 }
 0x74e   :  { %v1084_v58 = vpop.f32.mrf.mxu1 }
 0x750   :  { %v663_v59 = vpop.f32.mrf.mxu1 }
 0x752   :  { %v1087_v60 = vpop.f32.mrf.mxu1 }
 0x754   :  { %v666_v61 = vpop.f32.mrf.mxu1 }
 0x756   :  { %v1088_v62 = vpop.f32.mrf.mxu1 }
 0x758   :  { %v671_v63 = vpop.f32.mrf.mxu1 }
 0x759   :  { %698 = vmatpush1.msra.mxu0 %v671_v63 }
 0x75a   :  { %v1091_v10 = vpop.f32.mrf.mxu1  ;;  %699 = vmatprep.subr.mxu0 %v1185_v0 }
 0x75b   :  { %700 = vmatpush1.msra.mxu0 %v666_v61 }
 0x75c   :  { %v674_v12 = vpop.f32.mrf.mxu1  ;;  %701 = vmatprep.subr.mxu0 %v1185_v0 }
 0x75d   :  { %702 = vmatpush1.msra.mxu0 %v663_v59 }
 0x75e   :  { %v1092_v13 = vpop.f32.mrf.mxu1  ;;  %703 = vmatprep.subr.mxu0 %v1185_v0 }
 0x75f   :  { %704 = vmatpush1.msra.mxu0 %v658_v57 }
 0x760   :  { %705 = vmatprep.subr.mxu0 %v1185_v0  ;;  %v679_v14 = vpop.f32.mrf.mxu1 }
 0x761   :  { %706 = vmatpush1.msra.mxu0 %v655_v55 }
 0x762   :  { %707 = vmatprep.subr.mxu0 %v1185_v0  ;;  %v1095_v15 = vpop.f32.mrf.mxu1 }
 0x763   :  { %708 = vmatpush1.msra.mxu0 %v650_v53 }
 0x764   :  { %709 = vmatprep.subr.mxu0 %v1185_v0  ;;  %v682_v16 = vpop.f32.mrf.mxu1 }
 0x765   :  { %710 = vmatpush1.msra.mxu0 %v647_v51 }
 0x766   :  { %711 = vmatprep.subr.mxu0 %v1185_v0  ;;  %v1096_v17 = vpop.f32.mrf.mxu1 }
 0x767   :  { %712 = vmatpush1.msra.mxu0 %v1301_v9  ;;  %v685_v9 = vld [vmem:[%s1559_s4] sm:$0xff] }
 0x768   :  { %713 = vmatprep.subr.mxu0 %v1185_v0 }
 0x769   :  { %714 = vmatpush1.msra.mxu0 %v608_v48 }
 0x76a   :  { %715 = vmatprep.subr.mxu0 %v1185_v0 }
 0x76b   :  { %716 = vmatpush1.msra.mxu0 %v607_v47 }
 0x76c   :  { %717 = vmatprep.subr.mxu0 %v1185_v0 }
 0x76d   :  { %718 = vmatpush1.msra.mxu0 %v606_v41 }
 0x76e   :  { %719 = vmatprep.subr.mxu0 %v1185_v0 }
 0x76f   :  { %720 = vmatpush1.msra.mxu0 %v605_v39 }
 0x770   :  { %721 = vmatprep.subr.mxu0 %v1185_v0 }
 0x771   :  { %722 = vmatpush1.msra.mxu0 %v604_v30 }
 0x772   :  { %723 = vmatprep.subr.mxu0 %v1185_v0 }
 0x773   :  { %724 = vmatpush1.msra.mxu0 %v603_v31 }
 0x774   :  { %725 = vmatprep.subr.mxu0 %v1185_v0 }
 0x775   :  { %726 = vmatpush1.msra.mxu0 %v602_v6 }
 0x776   :  { %727 = vmatprep.subr.mxu0 %v1185_v0 }
 0x777   :  { %728 = vmatpush1.msra.mxu0 %v601_v25 }
 0x778   :  { %757 = vmatprep.subr.mxu0 %v1185_v0 }
 0x779   :  { %758 = vmatpush2.msra.mxu0 %v679_v14 }
 0x77a   :  { %759 = vmatprep.subr.mxu0 %v1185_v0 }
 0x77b   :  { %760 = vmatpush2.msra.mxu0 %v674_v12 }
 0x77c   :  { %762 = vmatmul.mubr.f32.vlgmr.msra.gmra.mxu0 %v685_v9 }
 0x83c   :  { %v763_v19 = vpop.f32.mrf.mxu0 }
 0x83d   :  { %v764_v11 = vadd.f32 %v763_v19, %v691_v18 }
 0x83e   :  { %v765_v20 = vpop.f32.mrf.mxu0 }
 0x83f   :  { %767 = vst [vmem:[#allocation7] sm:$0xff] %v764_v11 }
 0x840   :  { %1166 = shalt.err (!%p1163_p0)
}
 0x841   :  { %777 = dma.vmem_to_hbm [thread:$0]  %s775_s17, 128, %s1561_s6, [#allocation4]  }
 0x842   :  { %1179 = dma.done.wait [#allocation4], 128  }
 0x843   :  { %1180 = vsyncadd [#allocation4], 4294967168 }
 0x844   :  { %781 = vsyncpa [#allocation3], 1 }
 0x845   :  { %782 = vsyncpa [#allocation6], 1 }
 0x846   :  { %783 = vsyncpa [#allocation4], 1 }

</bundles_post_ra>
